<compile_context>
chip_gen: v7x
topology: tpu7x:2x2x1
jax: 0.10.0
libtpu: 0.0.40
codegen_flags: <defaults>
</compile_context>

<pallas_src>
import math

import jax
import jax.numpy as jnp
from jax.experimental import pallas as pl
from jax.experimental.pallas import tpu as pltpu


# --------------------------------- helpers -----------------------------------
def _round_up(x, m):
    return (x + m - 1) // m * m


def _vmem_capacity_bytes():
    try:
        return int(pltpu.get_tpu_info().vmem_capacity_bytes)
    except Exception:
        return 64 * 1024 * 1024          # conservative (v7x per-core VMEM)


# ----------------------------- kernel 1: KAN + projections -------------------
def _kan_kernel(h_ref, basis_ref, wb_t_ref, ws_t_ref, a_ref,
                hw_ref, e_dst_ref, e_src_ref):
    h = h_ref[...]                                              # (tile, F_in) f32
    silu = (h * jax.nn.sigmoid(h)).astype(jnp.bfloat16)

    # KANLayer: HW = SiLU(h) @ Wb^T + B(h) @ Ws^T   (bf16 MXU, f32 accumulate)
    # TODO(synk): fuse into one K=(F_in+S) matmul over a stacked weight once the
    # unaligned (72-lane) in-kernel concat is verified safe on Mosaic; kept as two
    # dots + add for lowering safety (small MXU/VALU win only).
    hw = jnp.dot(silu, wb_t_ref[...], preferred_element_type=jnp.float32)
    hw = hw + jnp.dot(basis_ref[...], ws_t_ref[...],
                      preferred_element_type=jnp.float32)       # (tile, F_pad) f32
    hw_ref[...] = hw.astype(jnp.bfloat16)

    # Attention projections; a is lane-major (2, F_pad): row 0 = a_dst, row 1 = a_src.
    # NT-form dots emit e_dst as a column and e_src as a lane-oriented row, so the
    # attention kernel never needs an XLU transpose.
    a = a_ref[...]
    e_dst_ref[...] = jax.lax.dot_general(
        hw, a[0:1, :], (((1,), (1,)), ((), ())),
        preferred_element_type=jnp.float32)                     # (tile, 1)
    e_src_ref[...] = jax.lax.dot_general(
        a[1:2, :], hw, (((1,), (1,)), ((), ())),
        preferred_element_type=jnp.float32)                     # (1, tile)


# ------------------- kernel 2: online-softmax attention + aggregate ----------
def _make_attn_kernel(hw_resident, tile_src):
    def _attn_kernel(flags_ref, e_dst_ref, e_src_ref, adj_ref, hw_ref, out_ref,
                     m_sc, l_sc):
        i = pl.program_id(0)
        j = pl.program_id(1)

        @pl.when(j == 0)
        def _init():
            m_sc[...] = jnp.full_like(m_sc, -1e30)
            l_sc[...] = jnp.zeros_like(l_sc)
            out_ref[...] = jnp.zeros_like(out_ref)   # accumulate directly into out

        # Skip entirely-empty adjacency tiles (scalar-prefetched flag in SMEM).
        @pl.when(flags_ref[i, j] != 0)
        def _compute():
            mask = adj_ref[...] > 0                              # int8 -> bool
            s = e_dst_ref[...] + e_src_ref[...]                  # (td,1)+(1,ts)
            # Mask BEFORE the running max (matches masked_fill(-9e15) semantics);
            # -1e30 (not -inf) avoids inf-inf NaNs in the rescale terms.
            s = jnp.where(mask, s, jnp.float32(-1e30))

            m_prev = m_sc[...]
            m_new = jnp.maximum(m_prev, jnp.max(s, axis=-1, keepdims=True))
            alpha = jnp.exp(m_prev - m_new)
            # TODO(synk): on v6e/v7x the exp/select chain could run in bf16 (EUP
            # bf16) for ~2x elementwise throughput; kept f32 for parity with the
            # f32 PyTorch layer (and v5e has no bf16 VPU/EUP).
            p = jnp.where(mask, jnp.exp(s - m_new), 0.0)
            l_sc[...] = alpha * l_sc[...] + jnp.sum(p, axis=-1, keepdims=True)

            if hw_resident:
                src0 = pl.multiple_of(j * tile_src, 128)
                hw_blk = hw_ref[pl.ds(src0, tile_src), :]        # VMEM-resident HW
            else:
                hw_blk = hw_ref[...]                             # streamed block
            out_ref[...] = alpha * out_ref[...] + jnp.dot(
                p.astype(jnp.bfloat16), hw_blk,
                preferred_element_type=jnp.float32)
            m_sc[...] = m_new

        # TODO(synk): F.dropout(attention, p=0.6, training=True) is stochastic;
        # eval-mode (identity) is implemented here.

        @pl.when(j == pl.num_programs(1) - 1)
        def _finalize():
            l = l_sc[...]
            inv = jnp.where(l > 0.0, pl.reciprocal(l, approx=True), 0.0)
            out_ref[...] = out_ref[...] * inv

    return _attn_kernel


# --------------------------------- wrapper -----------------------------------
def kagat_forward(h, basis, wb_t, ws_t, a, adj, *,
                  block_dst=2048, block_src=512, block_kan=4096):
    """h:(N,F_in) f32, basis:(N,S) f32, wb_t:(F_in,F_out), ws_t:(S,F_out),
    a:(2*F_out,1), adj:(N,N) with adj[dst,src]=1 iff edge dst<-src."""
    n, f_in = h.shape
    f_out = wb_t.shape[1]
    sdim = ws_t.shape[0]

    f_pad = _round_up(f_out, 128)                    # lane-dense HW / out

    # ---- tile selection (per-generation VMEM aware) ----
    n128 = _round_up(n, 128)
    tile_src = min(_round_up(block_src, 128), n128)
    tile_dst = min(_round_up(block_dst, 128), n128)
    tile_dst = max(tile_src, (tile_dst // tile_src) * tile_src)   # multiple of src
    # Feed both v7x TensorCores: ensure >= 2 dst tiles when there are enough rows.
    if n128 >= 2 * tile_src and n128 // tile_dst < 2:
        tile_dst = max(tile_src, (n128 // (2 * tile_src)) * tile_src)
    n_pad = _round_up(n128, tile_dst)
    n_dst = n_pad // tile_dst
    n_src = n_pad // tile_src

    # kernel-1 row tile: large (per-step footprint is tiny), a divisor of n_pad.
    k = max(1, min(n_dst, _round_up(block_kan, 128) // tile_dst))
    while n_dst % k:
        k -= 1
    tile_kan = k * tile_dst
    n_kan = n_pad // tile_kan

    vmem_cap = _vmem_capacity_bytes()
    vmem_limit = min(int(vmem_cap * 3 // 4), 112 * 1024 * 1024)

    # HW residency: full (n_pad, f_pad) bf16 slab kept in VMEM for the whole
    # kernel-2 grid (counted double-buffered, conservatively) + per-step streams.
    hw_bytes = n_pad * f_pad * 2
    stream_bytes = (2 * tile_dst * 4 + 2 * tile_src * 4        # e_dst / e_src
                    + 2 * tile_dst * tile_src                  # adj int8
                    + 2 * tile_dst * f_pad * 4                 # out
                    + 2 * tile_dst * 4)                        # m, l scratch
    hw_resident = (2 * hw_bytes + stream_bytes) <= int(0.6 * vmem_limit)

    # ---- boundary padding + dtype conversion (cheap XLA ops, outside hot loop) --
    h_p = jnp.zeros((n_pad, f_in), jnp.float32).at[:n].set(h.astype(jnp.float32))
    basis_p = jnp.zeros((n_pad, sdim), jnp.bfloat16).at[:n].set(
        basis.astype(jnp.bfloat16))
    wb_p = jnp.zeros((f_in, f_pad), jnp.bfloat16).at[:, :f_out].set(
        wb_t.astype(jnp.bfloat16))
    ws_p = jnp.zeros((sdim, f_pad), jnp.bfloat16).at[:, :f_out].set(
        ws_t.astype(jnp.bfloat16))
    a_pack = jnp.zeros((2, f_pad), jnp.float32)      # lane-major attention vector
    a_pack = a_pack.at[0, :f_out].set(a[:f_out, 0]).at[1, :f_out].set(a[f_out:, 0])
    adj_p = jnp.zeros((n_pad, n_pad), jnp.int8).at[:n, :n].set(adj.astype(jnp.int8))

    # Per-(dst-tile, src-tile) nonzero flags for the sparsity skip (SMEM prefetch).
    flags = (adj_p.reshape(n_dst, tile_dst, n_src, tile_src)
             .astype(jnp.int32).sum(axis=(1, 3)) > 0).astype(jnp.int32)

    # ---- kernel 1: KAN transform + attention projections (row-tiled) ----
    # TODO(synk): the B-spline basis could be recomputed per tile in-kernel to cut
    # its HBM traffic further; it is precomputed (bf16) in the wrapper for clarity.
    hw, e_dst, e_src = pl.pallas_call(
        _kan_kernel,
        out_shape=(jax.ShapeDtypeStruct((n_pad, f_pad), jnp.bfloat16),
                   jax.ShapeDtypeStruct((n_pad, 1), jnp.float32),
                   jax.ShapeDtypeStruct((1, n_pad), jnp.float32)),
        grid_spec=pltpu.PrefetchScalarGridSpec(
            num_scalar_prefetch=0,
            grid=(n_kan,),
            in_specs=[pl.BlockSpec((tile_kan, f_in), lambda i: (i, 0)),
                      pl.BlockSpec((tile_kan, sdim), lambda i: (i, 0)),
                      pl.BlockSpec((f_in, f_pad), lambda i: (0, 0)),
                      pl.BlockSpec((sdim, f_pad), lambda i: (0, 0)),
                      pl.BlockSpec((2, f_pad), lambda i: (0, 0))],
            out_specs=[pl.BlockSpec((tile_kan, f_pad), lambda i: (i, 0)),
                       pl.BlockSpec((tile_kan, 1), lambda i: (i, 0)),
                       pl.BlockSpec((1, tile_kan), lambda i: (0, i))]),
        compiler_params=pltpu.CompilerParams(
            dimension_semantics=("parallel",),
            vmem_limit_bytes=vmem_limit),
    )(h_p, basis_p, wb_p, ws_p, a_pack)

    # ---- kernel 2: masked online-softmax attention + aggregation ----
    if hw_resident:
        hw_spec = pl.BlockSpec((n_pad, f_pad), lambda i, j, flg: (0, 0))
    else:
        hw_spec = pl.BlockSpec((tile_src, f_pad), lambda i, j, flg: (j, 0))
    # TODO(synk): on v5e an adj pipeline_mode=pl.Buffered(3) (and larger src tiles)
    # would further hide the N^2-byte int8 stream; default double-buffering kept.

    cost = pl.CostEstimate(
        flops=int(2 * n_pad * n_pad * f_pad),
        transcendentals=int(n_pad * n_pad),
        bytes_accessed=int(n_pad * n_pad                                  # adj int8
                           + (1 if hw_resident else n_dst) * n_pad * f_pad * 2
                           + n_pad * f_pad * 4                            # out
                           + n_src * n_pad * 4 + n_dst * n_pad * 4))      # e_src/e_dst

    out = pl.pallas_call(
        _make_attn_kernel(hw_resident, tile_src),
        out_shape=jax.ShapeDtypeStruct((n_pad, f_pad), jnp.float32),
        grid_spec=pltpu.PrefetchScalarGridSpec(
            num_scalar_prefetch=1,
            grid=(n_dst, n_src),                           # (dst tiles, src tiles)
            in_specs=[pl.BlockSpec((tile_dst, 1), lambda i, j, flg: (i, 0)),
                      pl.BlockSpec((1, tile_src), lambda i, j, flg: (0, j)),
                      pl.BlockSpec((tile_dst, tile_src), lambda i, j, flg: (i, j)),
                      hw_spec],
            out_specs=pl.BlockSpec((tile_dst, f_pad), lambda i, j, flg: (i, 0)),
            scratch_shapes=[pltpu.VMEM((tile_dst, 1), jnp.float32),
                            pltpu.VMEM((tile_dst, 1), jnp.float32)]),
        compiler_params=pltpu.CompilerParams(
            dimension_semantics=("parallel", "arbitrary"),
            vmem_limit_bytes=vmem_limit),
        cost_estimate=cost,
    )(flags, e_dst, e_src, adj_p, hw)

    return out[:n, :f_out]


# --------------------------- JAX glue (not hot path) --------------------------
def bspline_basis(x, grid, k):
    """x: (N, F_in), grid: (F_in, G + 2k + 1) -> (N, F_in, G + k)."""
    x = x[:, :, None]
    g = grid[None, :, :]
    bases = ((x >= g[:, :, :-1]) & (x < g[:, :, 1:])).astype(jnp.float32)
    for p in range(1, k + 1):
        left = (x - g[:, :, :-(p + 1)]) / (g[:, :, p:-1] - g[:, :, :-(p + 1)])
        right = (g[:, :, p + 1:] - x) / (g[:, :, p + 1:] - g[:, :, 1:-p])
        bases = left * bases[:, :, :-1] + right * bases[:, :, 1:]
    return bases


# --------------------------------- main ---------------------------------------
if __name__ == "__main__":
    N, F_IN, F_OUT = 200, 8, 16
    G, K = 5, 3                                   # spline grid size / order

    key = jax.random.PRNGKey(0)
    k1, k2, k3, k4 = jax.random.split(key, 4)

    h = 0.8 * jax.random.normal(k1, (N, F_IN), dtype=jnp.float32)

    # Deterministic parameter init (shapes from __init__)
    wb = jax.random.uniform(k2, (F_OUT, F_IN), jnp.float32,
                            minval=-1.0, maxval=1.0) / math.sqrt(F_IN)
    ws = 0.1 * jax.random.uniform(k3, (F_OUT, F_IN * (G + K)), jnp.float32,
                                  minval=-1.0, maxval=1.0) / math.sqrt(F_IN)
    limit = 1.414 * math.sqrt(6.0 / (2 * F_OUT + 1))   # xavier_uniform_(gain=1.414)
    a = jax.random.uniform(k4, (2 * F_OUT, 1), jnp.float32,
                           minval=-limit, maxval=limit)

    # uniform spline knots on [-1, 1], extended by K on each side
    step = 2.0 / G
    knots = jnp.arange(-K, G + K + 1, dtype=jnp.float32) * step - 1.0
    grid = jnp.tile(knots[None, :], (F_IN, 1))

    # deterministic edge_index: unique edges, every node has incoming edges, and
    # the graph is block-local (nodes 0..127 / 128..199) so the kernel exercises
    # BOTH the skipped (all-zero adj tile) and the accumulated cross-iteration
    # online-softmax paths on the 2x2 (dst, src) tile grid.
    ids = jnp.arange(N)
    blk = jnp.where(ids < 128, 0, 128)
    sz = jnp.where(ids < 128, 128, N - 128)
    nb1 = (ids - blk + 1) % sz + blk
    nb3 = (ids - blk + 3) % sz + blk
    row = jnp.concatenate([ids, ids, ids])                       # destinations
    col = jnp.concatenate([nb1, nb3, ids])                       # sources

    # glue: B-spline basis + dense int8 edge mask
    basis = bspline_basis(h, grid, K).reshape(N, -1)
    adj = jnp.zeros((N, N), jnp.int8).at[row, col].set(1)

    # block_dst/src = 128 so the toy problem still exercises a 2x2 (dst, src) grid,
    # the cross-tile accumulation, and the empty-tile skip.
    out = kagat_forward(h, basis, wb.T, ws.T, a, adj,
                        block_dst=128, block_src=128)
    out = jax.block_until_ready(out)

    # pure-JAX f32 edge-list reference (mirrors the PyTorch forward, eval mode)
    HW = jax.nn.silu(h) @ wb.T + basis @ ws.T
    e = (jnp.concatenate([HW[row], HW[col]], axis=1) @ a)[:, 0]
    m = jax.ops.segment_max(e, row, num_segments=N)
    p = jnp.exp(e - m[row])
    denom = jax.ops.segment_sum(p, row, num_segments=N)
    att = p / denom[row]
    ref = jax.ops.segment_sum(att[:, None] * HW[col], row, num_segments=N)

    # bf16 MXU operands + approx reciprocal -> compare with bf16-level tolerance
    assert jnp.allclose(out, ref, atol=2e-2, rtol=2e-2), (
        float(jnp.max(jnp.abs(out - ref))))
    print("KERNEL_OK")
</pallas_src>

<mosaic_0001>
module attributes {stable_mosaic.version = 11 : i64} {
  func.func @_kan_kernel(%arg0: i32, %arg1: memref<256x8xf32, #tpu.memory_space<vmem>>, %arg2: memref<256x64xbf16, #tpu.memory_space<vmem>>, %arg3: memref<8x128xbf16, #tpu.memory_space<vmem>>, %arg4: memref<64x128xbf16, #tpu.memory_space<vmem>>, %arg5: memref<2x128xf32, #tpu.memory_space<vmem>>, %arg6: memref<256x128xbf16, #tpu.memory_space<vmem>>, %arg7: memref<256x1xf32, #tpu.memory_space<vmem>>, %arg8: memref<1x256xf32, #tpu.memory_space<vmem>>) attributes {dimension_semantics = [#tpu.dimension_semantics<parallel>], iteration_bounds = array<i64: 1>, scalar_prefetch = 0 : i64, scratch_operands = 0 : i64, tpu.core_type = #tpu.core_type<tc>, window_params = [{transform_indices = @transform_0, window_bounds = array<i64: 256, 8>}, {transform_indices = @transform_1, window_bounds = array<i64: 256, 64>}, {pipeline_mode = #tpu.pipeline_mode<synchronous>, transform_indices = @transform_2, window_bounds = array<i64: 8, 128>}, {pipeline_mode = #tpu.pipeline_mode<synchronous>, transform_indices = @transform_3, window_bounds = array<i64: 64, 128>}, {pipeline_mode = #tpu.pipeline_mode<synchronous>, transform_indices = @transform_4, window_bounds = array<i64: 2, 128>}, {transform_indices = @transform_5, window_bounds = array<i64: 256, 128>}, {transform_indices = @transform_6, window_bounds = array<i64: 256, 1>}, {transform_indices = @transform_7, window_bounds = array<i64: 1, 256>}]} {
    %c0 = arith.constant 0 : index
    %c0_0 = arith.constant 0 : index
    %0 = vector.load %arg1[%c0, %c0_0] : memref<256x8xf32, #tpu.memory_space<vmem>>, vector<256x8xf32>
    %1 = arith.negf %0 : vector<256x8xf32>
    %2 = math.exp %1 : vector<256x8xf32>
    %cst = arith.constant 1.000000e+00 : f32
    %3 = vector.broadcast %cst : f32 to vector<256x8xf32>
    %4 = arith.addf %3, %2 : vector<256x8xf32>
    %5 = arith.divf %3, %4 : vector<256x8xf32>
    %6 = arith.mulf %0, %5 : vector<256x8xf32>
    %7 = arith.truncf %6 : vector<256x8xf32> to vector<256x8xbf16>
    %c0_1 = arith.constant 0 : index
    %c0_2 = arith.constant 0 : index
    %8 = vector.load %arg3[%c0_1, %c0_2] : memref<8x128xbf16, #tpu.memory_space<vmem>>, vector<8x128xbf16>
    %cst_3 = arith.constant dense<0.000000e+00> : vector<256x128xf32>
    %9 = tpu.matmul %7, %8, %cst_3 {dimension_numbers = #tpu.dot_dimension_numbers<[1], [0], [0], [1], [0, 0, 1, 1], [], []>} : vector<256x8xbf16>, vector<8x128xbf16>, vector<256x128xf32> -> vector<256x128xf32>
    %c0_4 = arith.constant 0 : index
    %c0_5 = arith.constant 0 : index
    %10 = vector.load %arg2[%c0_4, %c0_5] : memref<256x64xbf16, #tpu.memory_space<vmem>>, vector<256x64xbf16>
    %c0_6 = arith.constant 0 : index
    %c0_7 = arith.constant 0 : index
    %11 = vector.load %arg4[%c0_6, %c0_7] : memref<64x128xbf16, #tpu.memory_space<vmem>>, vector<64x128xbf16>
    %cst_8 = arith.constant dense<0.000000e+00> : vector<256x128xf32>
    %12 = tpu.matmul %10, %11, %cst_8 {dimension_numbers = #tpu.dot_dimension_numbers<[1], [0], [0], [1], [0, 0, 1, 1], [], []>} : vector<256x64xbf16>, vector<64x128xbf16>, vector<256x128xf32> -> vector<256x128xf32>
    %13 = arith.addf %9, %12 : vector<256x128xf32>
    %14 = arith.truncf %13 : vector<256x128xf32> to vector<256x128xbf16>
    %c0_9 = arith.constant 0 : index
    %c0_10 = arith.constant 0 : index
    %15 = vector.load %arg6[%c0_9, %c0_10] : memref<256x128xbf16, #tpu.memory_space<vmem>>, vector<256x128xbf16>
    tpu.vector_store %arg6[%c0_9, %c0_10], %14 {strides = array<i32>} : memref<256x128xbf16, #tpu.memory_space<vmem>>, vector<256x128xbf16>,
    %c0_11 = arith.constant 0 : index
    %c0_12 = arith.constant 0 : index
    %16 = vector.load %arg5[%c0_11, %c0_12] : memref<2x128xf32, #tpu.memory_space<vmem>>, vector<2x128xf32>
    %17 = vector.extract_strided_slice %16 {offsets = [0, 0], sizes = [1, 128], strides = [1, 1]} : vector<2x128xf32> to vector<1x128xf32>
    %cst_13 = arith.constant dense<0.000000e+00> : vector<256x1xf32>
    %18 = tpu.matmul %13, %17, %cst_13 {dimension_numbers = #tpu.dot_dimension_numbers<[1], [1], [0], [0], [0, 0, 1, 0], [], []>} : vector<256x128xf32>, vector<1x128xf32>, vector<256x1xf32> -> vector<256x1xf32>
    %c0_14 = arith.constant 0 : index
    %c0_15 = arith.constant 0 : index
    %19 = vector.load %arg7[%c0_14, %c0_15] : memref<256x1xf32, #tpu.memory_space<vmem>>, vector<256x1xf32>
    tpu.vector_store %arg7[%c0_14, %c0_15], %18 {strides = array<i32>} : memref<256x1xf32, #tpu.memory_space<vmem>>, vector<256x1xf32>,
    %20 = vector.extract_strided_slice %16 {offsets = [1, 0], sizes = [1, 128], strides = [1, 1]} : vector<2x128xf32> to vector<1x128xf32>
    %cst_16 = arith.constant dense<0.000000e+00> : vector<1x256xf32>
    %21 = tpu.matmul %20, %13, %cst_16 {dimension_numbers = #tpu.dot_dimension_numbers<[1], [1], [0], [0], [0, 0, 1, 0], [], []>} : vector<1x128xf32>, vector<256x128xf32>, vector<1x256xf32> -> vector<1x256xf32>
    %c0_17 = arith.constant 0 : index
    %c0_18 = arith.constant 0 : index
    %22 = vector.load %arg8[%c0_17, %c0_18] : memref<1x256xf32, #tpu.memory_space<vmem>>, vector<1x256xf32>
    tpu.vector_store %arg8[%c0_17, %c0_18], %21 {strides = array<i32>} : memref<1x256xf32, #tpu.memory_space<vmem>>, vector<1x256xf32>,
    return
  }
  func.func @transform_0(%arg0: i32) -> (i32, i32) {
    %c0_i32 = arith.constant 0 : i32
    %c0_i32_0 = arith.constant 0 : i32
    return %arg0, %c0_i32 : i32, i32
  }
  func.func @transform_1(%arg0: i32) -> (i32, i32) {
    %c0_i32 = arith.constant 0 : i32
    %c0_i32_0 = arith.constant 0 : i32
    return %arg0, %c0_i32 : i32, i32
  }
  func.func @transform_2(%arg0: i32) -> (i32, i32) {
    %c0_i32 = arith.constant 0 : i32
    %c0_i32_0 = arith.constant 0 : i32
    %c0_i32_1 = arith.constant 0 : i32
    return %c0_i32, %c0_i32_0 : i32, i32
  }
  func.func @transform_3(%arg0: i32) -> (i32, i32) {
    %c0_i32 = arith.constant 0 : i32
    %c0_i32_0 = arith.constant 0 : i32
    %c0_i32_1 = arith.constant 0 : i32
    return %c0_i32, %c0_i32_0 : i32, i32
  }
  func.func @transform_4(%arg0: i32) -> (i32, i32) {
    %c0_i32 = arith.constant 0 : i32
    %c0_i32_0 = arith.constant 0 : i32
    %c0_i32_1 = arith.constant 0 : i32
    return %c0_i32, %c0_i32_0 : i32, i32
  }
  func.func @transform_5(%arg0: i32) -> (i32, i32) {
    %c0_i32 = arith.constant 0 : i32
    %c0_i32_0 = arith.constant 0 : i32
    return %arg0, %c0_i32 : i32, i32
  }
  func.func @transform_6(%arg0: i32) -> (i32, i32) {
    %c0_i32 = arith.constant 0 : i32
    %c0_i32_0 = arith.constant 0 : i32
    return %arg0, %c0_i32 : i32, i32
  }
  func.func @transform_7(%arg0: i32) -> (i32, i32) {
    %c0_i32 = arith.constant 0 : i32
    %c0_i32_0 = arith.constant 0 : i32
    return %c0_i32, %arg0 : i32, i32
  }
}

</mosaic_0001>

<bundles_post_ra>
// kernel: tpu_custom_call.1
= control target key start
LH: loop header
LB: loop body
LE: loop exit
PB: predicated region body
PF: predicated region fallthrough
CT: control target
= control target key end

     0   :  { %13 = vsyncpa [#allocation3], 0  ;;  %vm443_vm0 = vcmask 523264   ;;  %vm702_vm1 = vcmask 1043456   ;;  %vm653_vm2 = vcmask 64512   ;;  %s2605_s0 = inlined_call_operand.vmem [shape: f32[256,8], index: 0, kind: input, shape index: {}]   ;;  %s2606_s1 = inlined_call_operand.vmem [shape: bf16[256,64], index: 1, kind: input, shape index: {}]   ;;  %s2607_s2 = inlined_call_operand.vmem [shape: bf16[8,128], index: 2, kind: input, shape index: {}]   ;;  %s2608_s3 = inlined_call_operand.vmem [shape: bf16[64,128], index: 3, kind: input, shape index: {}]   ;;  %s2609_s4 = inlined_call_operand.vmem [shape: f32[2,128], index: 4, kind: input, shape index: {}]   ;;  %s2610_s5 = inlined_call_operand.hbm [shape: bf16[256,128], index: 5, kind: output, shape index: {0}]   ;;  %s2611_s6 = inlined_call_operand.vmem [shape: f32[256,1], index: 6, kind: output, shape index: {1}]   ;;  %s2612_s7 = inlined_call_operand.hbm [shape: f32[1,256], index: 7, kind: output, shape index: {2}]  }
   0x1   :  { %v1750_v0 = vld [vmem:[%s2608_s3] sm:$0xff]   ;;  %v1751_v1 = vld [vmem:[%s2608_s3 + $0x8] sm:$0xff]   ;;  %v1752_v2 = vld [vmem:[%s2608_s3 + $0x10] sm:$0xff]  }
   0x2   :  { %1606 = vmatprep.subr.bf16.mxu0 %v1750_v0  ;;  %v1754_v3 = vld [vmem:[%s2606_s1] sm:$0xff]   ;;  %v1753_v5 = vld [vmem:[%s2608_s3 + $0x18] sm:$0xff]   ;;  %v2018_v8 = vld [vmem:[%s2605_s0 + $0x8] sm:$0xff] }
   0x3   :  { %1607 = vmatpush3.bf16.msra.mxu0 %v1750_v0  ;;  %v298_v4 = vld [vmem:[%s2607_s2] sm:$0xf]  ;;  %1614 = vmatprep.mubr.msk.bf16.mxu0 %vm443_vm0, %v1754_v3  ;;  %v1293_v10 = vmul.f32 -1.442695, %v2018_v8  ;;  %v2025_v11 = vld [vmem:[%s2605_s0 + $0x10] sm:$0xff]  ;;  %v2030_v12 = vld [vmem:[%s2605_s0 + $0x18] sm:$0xff] }
   0x4   :  { %1608 = vmatprep.subr.bf16.mxu0 %v1751_v1  ;;  %1744 = vmatprep.subr.msk.bf16.mxu1 %vm702_vm1, %v298_v4  ;;  %v704_v6 = vsel %vm702_vm1, %v298_v4, 0  ;;  %v2013_v7 = vld [vmem:[%s2605_s0] sm:$0xff]  ;;  %v1294_v13 = vmul.f32 -1.442695, %v2025_v11  ;;  %v1295_v14 = vmul.f32 -1.442695, %v2030_v12 }
   0x5   :  { %1647 = vmatpush3.bf16.msra.mxu1 %v704_v6  ;;  %v1292_v9 = vmul.f32 -1.442695, %v2013_v7  ;;  %v2037_v15 = vld [vmem:[%s2605_s0 + $0x20] sm:$0xff]  ;;  %v2042_v16 = vld [vmem:[%s2605_s0 + $0x28] sm:$0xff]  ;;  %v2048_v18 = vld [vmem:[%s2605_s0 + $0x30] sm:$0xff] }
   0x6   :  { %v1296_v17 = vmul.f32 -1.442695, %v2037_v15  ;;  %v2053_v19 = vld [vmem:[%s2605_s0 + $0x38] sm:$0xff]  ;;  %v1297_v20 = vmul.f32 -1.442695, %v2042_v16  ;;  %v1755_v23 = vld [vmem:[%s2606_s1 + $0x8] sm:$0xff]  }
   0x7   :  { %1609 = vmatpush3.bf16.msra.mxu0 %v1751_v1  ;;  %1770 = vpow2.f32 %v1292_v9  ;;  %v1298_v21 = vmul.f32 -1.442695, %v2048_v18  ;;  %v1299_v22 = vmul.f32 -1.442695, %v2053_v19  ;;  %v1756_v24 = vld [vmem:[%s2606_s1 + $0x10] sm:$0xff]   ;;  %v2067_v25 = vld [vmem:[%s2605_s0 + $0x40] sm:$0xff] }
   0x8   :  { %1610 = vmatprep.subr.bf16.mxu0 %v1752_v2  ;;  %1772 = vpow2.f32 %v1293_v10  ;;  %v2072_v26 = vld [vmem:[%s2605_s0 + $0x48] sm:$0xff]  ;;  %v2077_v27 = vld [vmem:[%s2605_s0 + $0x50] sm:$0xff]  ;;  %v1300_v28 = vmul.f32 -1.442695, %v2067_v25  ;;  %v2084_v30 = vld [vmem:[%s2605_s0 + $0x58] sm:$0xff] }
   0x9   :  { %1774 = vpow2.f32 %v1294_v13  ;;  %v1301_v29 = vmul.f32 -1.442695, %v2072_v26  ;;  %v1302_v31 = vmul.f32 -1.442695, %v2077_v27  ;;  %v1303_v32 = vmul.f32 -1.442695, %v2084_v30 }
   0xa   :  { %1776 = vpow2.f32 %v1295_v14  ;;  %v1757_v40 = vld [vmem:[%s2606_s1 + $0x18] sm:$0xff]   ;;  %v1758_v41 = vld [vmem:[%s2606_s1 + $0x20] sm:$0xff]   ;;  %v2107_v54 = vld [vmem:[%s2605_s0 + $0x68] sm:$0xff] }
   0xb   :  { %1611 = vmatpush3.bf16.msra.mxu0 %v1752_v2  ;;  %1778 = vpow2.f32 %v1296_v17  ;;  %v2099_v44 = vld [vmem:[%s2605_s0 + $0x60] sm:$0xff]  ;;  %v1759_v56 = vld [vmem:[%s2606_s1 + $0x28] sm:$0xff]   ;;  %v2115_v58 = vld [vmem:[%s2605_s0 + $0x70] sm:$0xff]  ;;  %v1305_v1 = vmul.f32 -1.442695, %v2107_v54 }
   0xc   :  { %1612 = vmatprep.subr.bf16.mxu0 %v1753_v5  ;;  %1780 = vpow2.f32 %v1297_v20  ;;  %v1304_v51 = vmul.f32 -1.442695, %v2099_v44  ;;  %v1760_v61 = vld [vmem:[%s2606_s1 + $0x30] sm:$0xff]   ;;  %v2123_v62 = vld [vmem:[%s2605_s0 + $0x78] sm:$0xff]  ;;  %v2129_v2 = vld [vmem:[%s2605_s0 + $0x80] sm:$0xff] }
   0xd   :  { %1782 = vpow2.f32 %v1298_v21  ;;  %v2135_v6 = vld [vmem:[%s2605_s0 + $0x88] sm:$0xff]  ;;  %v1307_v13 = vmul.f32 -1.442695, %v2123_v62  ;;  %v2142_v14 = vld [vmem:[%s2605_s0 + $0x90] sm:$0xff]  ;;  %v1308_v21 = vmul.f32 -1.442695, %v2129_v2 }
   0xe   :  { %1784 = vpow2.f32 %v1299_v22 }
   0xf   :  { %1613 = vmatpush3.bf16.msra.mxu0 %v1753_v5  ;;  %1786 = vpow2.f32 %v1300_v28  ;;  %v1306_v5 = vmul.f32 -1.442695, %v2115_v58 }
  0x10   :  { %1788 = vpow2.f32 %v1301_v29 }
  0x11   :  { %v1771_v33 = vpop.eup %1770  ;;  %1790 = vpow2.f32 %v1302_v31 }
  0x12   :  { %1615 = vmatmul.mubr.msk.bf16.vlgmr.msra.gmra.mrb[0].mxu0 %vm443_vm0, %v1755_v23  ;;  %v1773_v34 = vpop.eup %1772  ;;  %v154_v35 = vadd.f32 1.0, %v1771_v33  ;;  %1792 = vpow2.f32 %v1303_v32  ;;  %v1310_v32 = vmul.f32 -1.442695, %v2142_v14 }
  0x13   :  { %1618 = vmatprep.mubr.msk.bf16.mxu0 %vm443_vm0, %v1756_v24  ;;  %v1775_v36 = vpop.eup %1774  ;;  %v155_v37 = vadd.f32 1.0, %v1773_v34  ;;  %v1309_v24 = vmul.f32 -1.442695, %v2135_v6 }
  0x14   :  { %v1777_v38 = vpop.eup %1776  ;;  %1794 = vrcp.f32 %v154_v35  ;;  %v156_v39 = vadd.f32 1.0, %v1775_v36 }
  0x15   :  { %v1779_v42 = vpop.eup %1778  ;;  %1796 = vrcp.f32 %v155_v37  ;;  %v157_v43 = vadd.f32 1.0, %v1777_v38  ;;  %v1761_v38 = vld [vmem:[%s2606_s1 + $0x38] sm:$0xff]  }
  0x16   :  { %v1781_v45 = vpop.eup %1780  ;;  %1798 = vrcp.f32 %v156_v39  ;;  %v158_v46 = vadd.f32 1.0, %v1779_v42  ;;  %v2187_v42 = vld [vmem:[%s2605_s0 + $0xb8] sm:$0xff] }
  0x17   :  { %v1783_v47 = vpop.eup %1782  ;;  %1800 = vrcp.f32 %v157_v43  ;;  %v159_v48 = vadd.f32 1.0, %v1781_v45 }
  0x18   :  { %v1785_v49 = vpop.eup %1784  ;;  %1802 = vrcp.f32 %v158_v46  ;;  %v160_v50 = vadd.f32 1.0, %v1783_v47 }
  0x19   :  { %1804 = vrcp.f32 %v159_v48  ;;  %v161_v52 = vadd.f32 1.0, %v1785_v49  ;;  %v1787_v53 = vpop.eup %1786 }
  0x1a   :  { %1619 = vmatmul.mubr.msk.bf16.gmra.mrb[4].mxu0 %vm443_vm0, %v1757_v40  ;;  %1806 = vrcp.f32 %v160_v50  ;;  %v1789_v55 = vpop.eup %1788  ;;  %v162_v57 = vadd.f32 1.0, %v1787_v53 }
  0x1b   :  { %1622 = vmatprep.mubr.msk.bf16.mxu0 %vm443_vm0, %v1758_v41  ;;  %1808 = vrcp.f32 %v161_v52  ;;  %v1791_v59 = vpop.eup %1790  ;;  %v163_v60 = vadd.f32 1.0, %v1789_v55  ;;  %v1762_v41 = vld [vmem:[%s2606_s1 + $0x40] sm:$0xff]  }
  0x1c   :  { %1810 = vpow2.f32 %v1304_v51  ;;  %v1793_v63 = vpop.eup %1792  ;;  %v164_v0 = vadd.f32 1.0, %v1791_v59 }
  0x1d   :  { %1812 = vrcp.f32 %v162_v57  ;;  %v165_v4 = vadd.f32 1.0, %v1793_v63 }
  0x1e   :  { %v1795_v3 = vpop.eup %1794  ;;  %1814 = vrcp.f32 %v163_v60 }
  0x1f   :  { %v1797_v9 = vpop.eup %1796  ;;  %v250_v10 = vmul.f32 %v1795_v3, %v2013_v7  ;;  %1816 = vrcp.f32 %v164_v0  ;;  %v2150_v7 = vld [vmem:[%s2605_s0 + $0x98] sm:$0xff] }
  0x20   :  { %v1799_v17 = vpop.eup %1798  ;;  %v251_v20 = vmul.f32 %v1797_v9, %v2018_v8  ;;  %1818 = vrcp.f32 %v165_v4  ;;  %v2158_v8 = vld [vmem:[%s2605_s0 + $0xa0] sm:$0xff]  ;;  %v1311_v35 = vmul.f32 -1.442695, %v2150_v7 }
  0x21   :  { %v1801_v22 = vpop.eup %1800  ;;  %v252_v23 = vmul.f32 %v1799_v17, %v2025_v11  ;;  %1820 = vpow2.f32 %v1305_v1  ;;  %v2165_v11 = vld [vmem:[%s2605_s0 + $0xa8] sm:$0xff]  ;;  %v1312_v39 = vmul.f32 -1.442695, %v2158_v8 }
  0x22   :  { %1623 = vmatmul.mubr.msk.bf16.gmra.mrb[8].mxu0 %vm443_vm0, %v1759_v56  ;;  %v1803_v28 = vpop.eup %1802  ;;  %v282_v29 = vpack.c.bf16 %v251_v20, %v250_v10  ;;  %v253_v31 = vmul.f32 %v1801_v22, %v2030_v12  ;;  %1822 = vpow2.f32 %v1306_v5 }
  0x23   :  { %1626 = vmatprep.mubr.msk.bf16.mxu0 %vm443_vm0, %v1760_v61  ;;  %v1805_v33 = vpop.eup %1804  ;;  %v254_v34 = vmul.f32 %v1803_v28, %v2037_v15  ;;  %1824 = vpow2.f32 %v1307_v13  ;;  %v2178_v15 = vld [vmem:[%s2605_s0 + $0xb0] sm:$0xff] }
  0x24   :  { %v1807_v36 = vpop.eup %1806  ;;  %1648 = vmatprep.mubr.msk.bf16.mxu1 %vm653_vm2, %v282_v29  ;;  %v283_v37 = vpack.c.bf16 %v253_v31, %v252_v23  ;;  %v255_v12 = vmul.f32 %v1805_v33, %v2042_v16  ;;  %1826 = vpow2.f32 %v1308_v21  ;;  %v1313_v16 = vmul.f32 -1.442695, %v2165_v11 }
  0x25   :  { %v1809_v40 = vpop.eup %1808  ;;  %1828 = vpow2.f32 %v1309_v24 }
  0x26   :  { %14 = vsyncpa [#allocation5], 0  ;;  %v1811_v43 = vpop.eup %1810  ;;  %1649 = vmatmul.mubr.msk.bf16.vlgmr.msra.gmra.mrb[0].mxu1 %vm653_vm2, %v283_v37  ;;  %v284_v45 = vpack.c.bf16 %v255_v12, %v254_v34  ;;  %v256_v46 = vmul.f32 %v1807_v36, %v2048_v18  ;;  %v257_v47 = vmul.f32 %v1809_v40, %v2053_v19  ;;  %1830 = vpow2.f32 %v1310_v32  ;;  %v2195_v48 = vld [vmem:[%s2605_s0 + $0xc0] sm:$0xff]  ;;  %v1763_v0 = vld [vmem:[%s2606_s1 + $0x48] sm:$0xff]   ;;  %s1946_s22 = smov [#allocation2]  }
  0x27   :  { %v1813_v49 = vpop.eup %1812  ;;  %v166_v50 = vadd.f32 1.0, %v1811_v43  ;;  %1832 = vpow2.f32 %v1311_v35  ;;  %v1314_v51 = vmul.f32 -1.442695, %v2178_v15  ;;  %v1315_v18 = vmul.f32 -1.442695, %v2187_v42  ;;  %v1764_v3 = vld [vmem:[%s2606_s1 + $0x50] sm:$0xff]  }
  0x28   :  { %v1815_v52 = vpop.eup %1814  ;;  %1652 = vmatprep.mubr.msk.bf16.mxu1 %vm653_vm2, %v284_v45  ;;  %v258_v53 = vmul.f32 %v1813_v49, %v2067_v25  ;;  %1834 = vpow2.f32 %v1312_v39  ;;  %v1316_v56 = vmul.f32 -1.442695, %v2195_v48  ;;  %v285_v59 = vpack.c.bf16 %v257_v47, %v256_v46  ;;  %v2218_v20 = vld [vmem:[%s2605_s0 + $0xc8] sm:$0xff]  ;;  %v1765_v34 = vld [vmem:[%s2606_s1 + $0x58] sm:$0xff]   ;;  %v2229_v35 = vld [vmem:[%s2605_s0 + $0xd0] sm:$0xff]  ;;  %s1263_s23 = sshll.u32 %s1946_s22, 4  ;;  %s1264_s23 = int_to_ptr.vmem [resolvable:$true] %s1263_s23 }
  0x29   :  { %v1817_v19 = vpop.eup %1816  ;;  %v259_v55 = vmul.f32 %v1815_v52, %v2072_v26  ;;  %1836 = vrcp.f32 %v166_v50  ;;  %v1317_v29 = vmul.f32 -1.442695, %v2218_v20  ;;  %v1766_v12 = vld [vmem:[%s2606_s1 + $0x60] sm:$0xff]   ;;  %v1318_v46 = vmul.f32 -1.442695, %v2229_v35  ;;  %v2250_v47 = vld [vmem:[%s2605_s0 + $0xe8] sm:$0xff]  ;;  %p1903_p1 = scmp.lt.s32.totalorder %s1264_s23, %s1264_s23 }
  0x2a   :  { %1627 = vmatmul.mubr.msk.bf16.gmra.mrb[12].mxu0 %vm443_vm0, %v1761_v38  ;;  %v1819_v57 = vpop.eup %1818  ;;  %1838 = vpow2.f32 %v1313_v16  ;;  %v260_v5 = vmul.f32 %v1817_v19, %v2077_v27  ;;  %v2237_v38 = vld [vmem:[%s2605_s0 + $0xd8] sm:$0xff]  ;;  %vm1128_vm3 = vcmask 7168  }
  0x2b   :  { %1630 = vmatprep.mubr.msk.bf16.mxu0 %vm443_vm0, %v1762_v41  ;;  %v1821_v60 = vpop.eup %1820  ;;  %v286_v61 = vpack.c.bf16 %v259_v55, %v258_v53  ;;  %1840 = vpow2.f32 %v1314_v51  ;;  %v261_v9 = vmul.f32 %v1819_v57, %v2084_v30  ;;  %v2243_v41 = vld [vmem:[%s2605_s0 + $0xe0] sm:$0xff]  ;;  %v1319_v51 = vmul.f32 -1.442695, %v2237_v38  ;;  %v2265_v19 = vld [vmem:[%s2605_s0 + $0xf8] sm:$0xff] }
  0x2c   :  { %v1823_v25 = vpop.eup %1822  ;;  %v167_v63 = vadd.f32 1.0, %v1821_v60  ;;  %1842 = vpow2.f32 %v1315_v18  ;;  %v1320_v18 = vmul.f32 -1.442695, %v2243_v41  ;;  %v1321_v57 = vmul.f32 -1.442695, %v2250_v47 }
  0x2d   :  { %v1825_v1 = vpop.eup %1824  ;;  %v168_v26 = vadd.f32 1.0, %v1823_v25  ;;  %1844 = vpow2.f32 %v1316_v56  ;;  %v287_v24 = vpack.c.bf16 %v261_v9, %v260_v5 }
  0x2e   :  { %v1827_v4 = vpop.eup %1826  ;;  %1653 = vmatmul.mubr.msk.bf16.gmra.mrb[4].mxu1 %vm653_vm2, %v285_v59  ;;  %1846 = vrcp.f32 %v167_v63  ;;  %v169_v10 = vadd.f32 1.0, %v1825_v1 }
  0x2f   :  { %v1829_v13 = vpop.eup %1828  ;;  %1656 = vmatprep.mubr.msk.bf16.mxu1 %vm653_vm2, %v286_v61  ;;  %1848 = vrcp.f32 %v168_v26  ;;  %v170_v17 = vadd.f32 1.0, %v1827_v4 }
  0x30   :  { %v1831_v21 = vpop.eup %1830  ;;  %1850 = vrcp.f32 %v169_v10  ;;  %v171_v22 = vadd.f32 1.0, %v1829_v13 }
  0x31   :  { %v1833_v27 = vpop.eup %1832  ;;  %1852 = vrcp.f32 %v170_v17  ;;  %v172_v30 = vadd.f32 1.0, %v1831_v21 }
  0x32   :  { %1631 = vmatmul.mubr.msk.bf16.gmra.mrb[16].mxu0 %vm443_vm0, %v1763_v0  ;;  %v1835_v23 = vpop.eup %1834  ;;  %1854 = vrcp.f32 %v171_v22  ;;  %v173_v28 = vadd.f32 1.0, %v1833_v27  ;;  %v1767_v0 = vld [vmem:[%s2606_s1 + $0x68] sm:$0xff]  }
  0x33   :  { %1634 = vmatprep.mubr.msk.bf16.mxu0 %vm443_vm0, %v1764_v3  ;;  %v1837_v31 = vpop.eup %1836  ;;  %1856 = vrcp.f32 %v172_v30  ;;  %v174_v32 = vadd.f32 1.0, %v1835_v23 }
  0x34   :  { %v1839_v33 = vpop.eup %1838  ;;  %1858 = vrcp.f32 %v173_v28  ;;  %v262_v43 = vmul.f32 %v1837_v31, %v2099_v44  ;;  %v2257_v44 = vld [vmem:[%s2605_s0 + $0xf0] sm:$0xff]  ;;  %s1898_s0 = scalar_lea.vmem %s1264_s23, 2048 }
  0x35   :  { %v1841_v36 = vpop.eup %1840  ;;  %v175_v37 = vadd.f32 1.0, %v1839_v33  ;;  %1860 = vrcp.f32 %v174_v32  ;;  %v1322_v61 = vmul.f32 -1.442695, %v2257_v44  ;;  %p1899_p0 = scmp.ne.s32.totalorder %s1264_s23, %s1898_s0  ;;  %p1904_p2 = scmp.lt.s32.totalorder %s1898_s0, %s1898_s0 }
  0x36   :  { %v1843_v39 = vpop.eup %1842  ;;  %1657 = vmatmul.mubr.msk.bf16.gmra.mrb[8].mxu1 %vm653_vm2, %v287_v24  ;;  %v176_v40 = vadd.f32 1.0, %v1841_v36  ;;  %1862 = vpow2.f32 %v1317_v29 }
  0x37   :  { %v1845_v16 = vpop.eup %1844  ;;  %1864 = vrcp.f32 %v175_v37  ;;  %v177_v45 = vadd.f32 1.0, %v1843_v39  ;;  %p1905_p3 = por %p1904_p2, %p1903_p1 }
  0x38   :  { %v1847_v49 = vpop.eup %1846  ;;  %1866 = vrcp.f32 %v176_v40  ;;  %v178_v50 = vadd.f32 1.0, %v1845_v16 }
  0x39   :  { %v1849_v52 = vpop.eup %1848  ;;  %v263_v53 = vmul.f32 %v1847_v49, %v2107_v54  ;;  %1868 = vrcp.f32 %v177_v45  ;;  %p1906_p4 = pnand %p1905_p3, %p1899_p0 }
  0x3a   :  { %1635 = vmatmul.mubr.msk.bf16.gmra.mrb[20].mxu0 %vm443_vm0, %v1765_v34  ;;  %v1851_v55 = vpop.eup %1850  ;;  %v264_v56 = vmul.f32 %v1849_v52, %v2115_v58  ;;  %1870 = vrcp.f32 %v178_v50  ;;  %v1323_v58 = vmul.f32 -1.442695, %v2265_v19 }
  0x3b   :  { %1638 = vmatprep.mubr.msk.bf16.mxu0 %vm443_vm0, %v1766_v12  ;;  %v1853_v59 = vpop.eup %1852  ;;  %v288_v60 = vpack.c.bf16 %v263_v53, %v262_v43  ;;  %v265_v54 = vmul.f32 %v1851_v55, %v2123_v62  ;;  %1872 = vpow2.f32 %v1318_v46  ;;  %v1768_v62 = vld [vmem:[%s2606_s1 + $0x70] sm:$0xff]  }
  0x3c   :  { %v1855_v25 = vpop.eup %1854  ;;  %v266_v63 = vmul.f32 %v1853_v59, %v2129_v2  ;;  %1874 = vpow2.f32 %v1319_v51 }
  0x3d   :  { %v1857_v1 = vpop.eup %1856  ;;  %1660 = vmatprep.mubr.msk.bf16.mxu1 %vm653_vm2, %v288_v60  ;;  %v289_v26 = vpack.c.bf16 %v265_v54, %v264_v56  ;;  %v267_v3 = vmul.f32 %v1855_v25, %v2135_v6  ;;  %1876 = vpow2.f32 %v1320_v18 }
  0x3e   :  { %v1859_v4 = vpop.eup %1858  ;;  %1878 = vpow2.f32 %v1321_v57  ;;  %v268_v9 = vmul.f32 %v1857_v1, %v2142_v14 }
  0x3f   :  { %v1861_v2 = vpop.eup %1860  ;;  %1661 = vmatmul.mubr.msk.bf16.gmra.mrb[12].mxu1 %vm653_vm2, %v289_v26  ;;  %v290_v5 = vpack.c.bf16 %v267_v3, %v266_v63  ;;  %v269_v10 = vmul.f32 %v1859_v4, %v2150_v7  ;;  %1880 = vpow2.f32 %v1322_v61  ;;  %v1028_v63 = vlaneseq }
  0x40   :  { %v1863_v13 = vpop.eup %1862  ;;  %v270_v17 = vmul.f32 %v1861_v2, %v2158_v8  ;;  %1882 = vpow2.f32 %v1323_v58  ;;  %v1769_v8 = vld [vmem:[%s2606_s1 + $0x78] sm:$0xff]  }
  0x41   :  { %v1865_v6 = vpop.eup %1864  ;;  %1664 = vmatprep.mubr.msk.bf16.mxu1 %vm653_vm2, %v290_v5  ;;  %v179_v21 = vadd.f32 1.0, %v1863_v13  ;;  %v291_v14 = vpack.c.bf16 %v269_v10, %v268_v9  ;;  %v2319_v26 = vshrl.u32 %v1028_v63, 7 }
  0x42   :  { %1639 = vmatmul.mubr.msk.bf16.gmra.mrb[24].mxu0 %vm443_vm0, %v1767_v0  ;;  %v1867_v22 = vpop.eup %1866  ;;  %v271_v27 = vmul.f32 %v1865_v6, %v2165_v11 }
  0x43   :  { %1642 = vmatprep.mubr.msk.bf16.mxu0 %vm443_vm0, %v1768_v62  ;;  %v1869_v30 = vpop.eup %1868  ;;  %1884 = vrcp.f32 %v179_v21  ;;  %v272_v32 = vmul.f32 %v1867_v22, %v2178_v15  ;;  %v1030_v62 = vsub.s32 0, %v2319_v26 }
  0x44   :  { %v1871_v7 = vpop.eup %1870  ;;  %v292_v23 = vpack.c.bf16 %v271_v27, %v270_v17  ;;  %v273_v33 = vmul.f32 %v1869_v30, %v2187_v42 }
  0x45   :  { %v1873_v24 = vpop.eup %1872  ;;  %v274_v15 = vmul.f32 %v1871_v7, %v2195_v48 }
  0x46   :  { %v1875_v28 = vpop.eup %1874  ;;  %v180_v29 = vadd.f32 1.0, %v1873_v24  ;;  %v293_v16 = vpack.c.bf16 %v273_v33, %v272_v32 }
  0x47   :  { %v1877_v31 = vpop.eup %1876  ;;  %1665 = vmatmul.mubr.msk.bf16.gmra.mrb[16].mxu1 %vm653_vm2, %v291_v14  ;;  %v181_v11 = vadd.f32 1.0, %v1875_v28 }
  0x48   :  { %v1879_v34 = vpop.eup %1878  ;;  %1668 = vmatprep.mubr.msk.bf16.mxu1 %vm653_vm2, %v292_v23  ;;  %1886 = vrcp.f32 %v180_v29  ;;  %v182_v36 = vadd.f32 1.0, %v1877_v31 }
  0x49   :  { %v1881_v37 = vpop.eup %1880  ;;  %1888 = vrcp.f32 %v181_v11  ;;  %v183_v12 = vadd.f32 1.0, %v1879_v34 }
  0x4a   :  { %1643 = vmatmul.mubr.msk.bf16.gmra.mrb[28].mxu0 %vm443_vm0, %v1769_v8  ;;  %v1883_v39 = vpop.eup %1882  ;;  %1890 = vrcp.f32 %v182_v36  ;;  %v184_v40 = vadd.f32 1.0, %v1881_v37 }
  0x4b   :  { %1892 = vrcp.f32 %v183_v12  ;;  %v185_v43 = vadd.f32 1.0, %v1883_v39 }
  0x4c   :  { %1894 = vrcp.f32 %v184_v40 }
  0x4d   :  { %v1885_v42 = vpop.eup %1884  ;;  %1896 = vrcp.f32 %v185_v43 }
  0x4e   :  { %v275_v45 = vmul.f32 %v1885_v42, %v2218_v20 }
  0x4f   :  { %1669 = vmatmul.mubr.msk.bf16.gmra.mrb[20].mxu1 %vm653_vm2, %v293_v16 }
  0x50   :  { %v294_v46 = vpack.c.bf16 %v275_v45, %v274_v15 }
  0x52   :  { %v1887_v49 = vpop.eup %1886  ;;  %1672 = vmatprep.mubr.msk.bf16.mxu1 %vm653_vm2, %v294_v46 }
  0x53   :  { %v1889_v50 = vpop.eup %1888  ;;  %v276_v51 = vmul.f32 %v1887_v49, %v2229_v35 }
  0x54   :  { %v1891_v52 = vpop.eup %1890  ;;  %v277_v53 = vmul.f32 %v1889_v50, %v2237_v38  ;;  %v2313_v38 = vld [vmem:[%s2609_s4] sm:$0x3] }
  0x55   :  { %v1893_v18 = vpop.eup %1892  ;;  %v278_v48 = vmul.f32 %v1891_v52, %v2243_v41  ;;  %v1162_v41 = vrot.slane %v2313_v38, 1  ;;  %v2323_v9 = vrot.slane %v2313_v38, %v1030_v62 }
  0x56   :  { %v1895_v55 = vpop.eup %1894  ;;  %v295_v56 = vpack.c.bf16 %v277_v53, %v276_v51  ;;  %v279_v57 = vmul.f32 %v1893_v18, %v2250_v47 }
  0x57   :  { %v1897_v20 = vpop.eup %1896  ;;  %v280_v60 = vmul.f32 %v1895_v55, %v2257_v44 }
  0x58   :  { %1673 = vmatmul.mubr.msk.bf16.gmra.mrb[24].mxu1 %vm653_vm2, %v295_v56  ;;  %v296_v59 = vpack.c.bf16 %v279_v57, %v278_v48  ;;  %v281_v54 = vmul.f32 %v1897_v20, %v2265_v19 }
  0x5a   :  { %1676 = vmatprep.mubr.msk.bf16.mxu1 %vm653_vm2, %v296_v59  ;;  %v297_v35 = vpack.c.bf16 %v281_v54, %v280_v60 }
  0x60   :  { %1677 = vmatmul.mubr.msk.bf16.gmra.mrb[28].mxu1 %vm653_vm2, %v297_v35 }
  0x61   :  { %1604 = vmatprep.mubr.f32.mxu1 %v1162_v41 }
  0xe5   :  { %v1616_v47 = vpop.f32.mrb[0].mxu0 }
  0xe6   :  { %v526_v61 = vpop.f32.mrb[1].mxu0 }
  0xe7   :  { %v1617_v44 = vpop.f32.mrb[2].mxu0 }
  0xe8   :  { %v529_v25 = vpop.f32.mrb[3].mxu0 }
  0xed   :  { %v1620_v19 = vpop.f32.mrb[4].mxu0 }
  0xee   :  { %v542_v0 = vpop.f32.mrb[5].mxu0 }
  0xef   :  { %v1621_v58 = vpop.f32.mrb[6].mxu0 }
  0xf0   :  { %v545_v1 = vpop.f32.mrb[7].mxu0 }
  0xf5   :  { %v1624_v3 = vpop.f32.mrb[8].mxu0 }
  0xf6   :  { %v558_v4 = vpop.f32.mrb[9].mxu0 }
  0xf7   :  { %v1625_v2 = vpop.f32.mrb[10].mxu0 }
  0xf8   :  { %v561_v5 = vpop.f32.mrb[11].mxu0 }
  0xf9   :  { %v1650_v10 = vpop.f32.mrb[0].mxu1 }
  0xfa   :  { %v749_v13 = vadd.f32 %v1650_v10, %v1616_v47  ;;  %v740_v17 = vpop.f32.mrb[1].mxu1 }
  0xfb   :  { %v741_v6 = vadd.f32 %v740_v17, %v526_v61  ;;  %v1651_v21 = vpop.f32.mrb[2].mxu1 }
  0xfc   :  { %v752_v27 = vadd.f32 %v1651_v21, %v1617_v44  ;;  %v743_v30 = vpop.f32.mrb[3].mxu1  ;;  %v1034_v14 = vmul.f32 %v2323_v9, %v749_v13 }
  0xfd   :  { %v2325_v22 = vpop.f32.mrb[12].mxu0  ;;  %v744_v23 = vadd.f32 %v743_v30, %v529_v25  ;;  %v1032_v8 = vmul.f32 %v2323_v9, %v741_v6 }
  0xfe   :  { %v2328_v7 = vpop.f32.mrb[13].mxu0  ;;  %v2333_v28 = vpack.c.bf16 %v752_v27, %v749_v13  ;;  %1068 = vadd.xlane.f32.xlu1 %v1034_v14  ;;  %v1035_v32 = vmul.f32 %v2323_v9, %v752_v27 }
  0xff   :  { %v2331_v24 = vpop.f32.mrb[14].mxu0  ;;  %v2337_v31 = vpack.c.bf16 %v744_v23, %v741_v6  ;;  %1064 = vadd.xlane.f32.xlu0 %v1032_v8  ;;  %v1033_v11 = vmul.f32 %v2323_v9, %v744_v23 }
 0x100   :  { %v2335_v29 = vpop.f32.mrb[15].mxu0  ;;  %1520 = vst [vmem:[#allocation2 + $0x8] sm:$0xff] %v2333_v28  }
 0x101   :  { %1444 = vst [vmem:[#allocation2] sm:$0xff] %v2337_v31   ;;  %v1654_v33 = vpop.f32.mrb[4].mxu1 }
 0x102   :  { %v765_v34 = vadd.f32 %v1654_v33, %v1620_v19  ;;  %1070 = vadd.xlane.f32.xlu1 %v1035_v32  ;;  %v756_v36 = vpop.f32.mrb[5].mxu1 }
 0x103   :  { %v757_v37 = vadd.f32 %v756_v36, %v542_v0  ;;  %v1655_v12 = vpop.f32.mrb[6].mxu1  ;;  %1066 = vadd.xlane.f32.xlu0 %v1033_v11 }
 0x104   :  { %v768_v40 = vadd.f32 %v1655_v12, %v1621_v58  ;;  %v759_v16 = vpop.f32.mrb[7].mxu1  ;;  %v1038_v43 = vmul.f32 %v2323_v9, %v765_v34 }
 0x105   :  { %v2343_v39 = vpop.f32.mrb[16].mxu0  ;;  %v760_v42 = vadd.f32 %v759_v16, %v545_v1  ;;  %v1036_v53 = vmul.f32 %v2323_v9, %v757_v37 }
 0x106   :  { %v2346_v15 = vpop.f32.mrb[17].mxu0  ;;  %v2350_v46 = vpack.c.bf16 %v768_v40, %v765_v34  ;;  %v1039_v49 = vmul.f32 %v2323_v9, %v768_v40 }
 0x107   :  { %v2348_v45 = vpop.f32.mrb[18].mxu0  ;;  %v2355_v51 = vpack.c.bf16 %v760_v42, %v757_v37  ;;  %1076 = vadd.xlane.f32.xlu0 %v1038_v43  ;;  %v1037_v55 = vmul.f32 %v2323_v9, %v760_v42 }
 0x108   :  { %v2353_v50 = vpop.f32.mrb[19].mxu0  ;;  %1522 = vst [vmem:[#allocation2 + $0x18] sm:$0xff] %v2350_v46   ;;  %1078 = vadd.xlane.f32.xlu1 %v1039_v49 }
 0x109   :  { %1521 = vst [vmem:[#allocation2 + $0x10] sm:$0xff] %v2355_v51   ;;  %v1658_v52 = vpop.f32.mrb[8].mxu1 }
 0x10a   :  { %v781_v18 = vadd.f32 %v1658_v52, %v1624_v3  ;;  %v772_v48 = vpop.f32.mrb[9].mxu1 }
 0x10b   :  { %v773_v56 = vadd.f32 %v772_v48, %v558_v4  ;;  %v1659_v57 = vpop.f32.mrb[10].mxu1  ;;  %1072 = vadd.xlane.f32.xlu0 %v1036_v53 }
 0x10c   :  { %v784_v59 = vadd.f32 %v1659_v57, %v1625_v2  ;;  %v775_v60 = vpop.f32.mrb[11].mxu1  ;;  %1074 = vadd.xlane.f32.xlu1 %v1037_v55  ;;  %v1042_v54 = vmul.f32 %v2323_v9, %v781_v18 }
 0x10d   :  { %v2361_v20 = vpop.f32.mrb[20].mxu0  ;;  %v776_v47 = vadd.f32 %v775_v60, %v561_v5  ;;  %v1040_v58 = vmul.f32 %v2323_v9, %v773_v56 }
 0x10e   :  { %v2364_v35 = vpop.f32.mrb[21].mxu0  ;;  %v2368_v44 = vpack.c.bf16 %v784_v59, %v781_v18  ;;  %v1043_v25 = vmul.f32 %v2323_v9, %v784_v59 }
 0x10f   :  { %v2366_v61 = vpop.f32.mrb[22].mxu0  ;;  %v2373_v0 = vpack.c.bf16 %v776_v47, %v773_v56  ;;  %1084 = vadd.xlane.f32.xlu0 %v1042_v54  ;;  %v1041_v3 = vmul.f32 %v2323_v9, %v776_v47 }
 0x110   :  { %v2371_v19 = vpop.f32.mrb[23].mxu0  ;;  %1524 = vst [vmem:[#allocation2 + $0x28] sm:$0xff] %v2368_v44   ;;  %1086 = vadd.xlane.f32.xlu1 %v1043_v25 }
 0x111   :  { %1523 = vst [vmem:[#allocation2 + $0x20] sm:$0xff] %v2373_v0  }
 0x112   :  { %v1662_v1 = vpop.f32.mrb[12].mxu1 }
 0x113   :  { %v797_v62 = vadd.f32 %v1662_v1, %v2325_v22  ;;  %v788_v4 = vpop.f32.mrb[13].mxu1  ;;  %1080 = vadd.xlane.f32.xlu0 %v1040_v58 }
 0x114   :  { %v789_v5 = vadd.f32 %v788_v4, %v2328_v7  ;;  %v1663_v10 = vpop.f32.mrb[14].mxu1  ;;  %1082 = vadd.xlane.f32.xlu1 %v1041_v3 }
 0x115   :  { %v2380_v2 = vpop.f32.mrb[24].mxu0  ;;  %v800_v17 = vadd.f32 %v1663_v10, %v2331_v24  ;;  %v791_v6 = vpop.f32.mrb[15].mxu1  ;;  %v1046_v21 = vmul.f32 %v2323_v9, %v797_v62 }
 0x116   :  { %v2383_v13 = vpop.f32.mrb[25].mxu0  ;;  %v792_v30 = vadd.f32 %v791_v6, %v2335_v29  ;;  %v1044_v8 = vmul.f32 %v2323_v9, %v789_v5 }
 0x117   :  { %v2387_v27 = vpop.f32.mrb[26].mxu0  ;;  %v2392_v14 = vpack.c.bf16 %v800_v17, %v797_v62  ;;  %1092 = vadd.xlane.f32.xlu0 %v1046_v21  ;;  %v1047_v7 = vmul.f32 %v2323_v9, %v800_v17 }
 0x118   :  { %v2390_v22 = vpop.f32.mrb[27].mxu0  ;;  %v2395_v23 = vpack.c.bf16 %v792_v30, %v789_v5  ;;  %v1045_v33 = vmul.f32 %v2323_v9, %v792_v30 }
 0x119   :  { %1526 = vst [vmem:[#allocation2 + $0x38] sm:$0xff] %v2392_v14   ;;  %1094 = vadd.xlane.f32.xlu1 %v1047_v7 }
 0x11a   :  { %1525 = vst [vmem:[#allocation2 + $0x30] sm:$0xff] %v2395_v23   ;;  %v1666_v24 = vpop.f32.mrb[16].mxu1 }
 0x11b   :  { %v813_v32 = vadd.f32 %v1666_v24, %v2343_v39  ;;  %v804_v29 = vpop.f32.mrb[17].mxu1  ;;  %1088 = vadd.xlane.f32.xlu0 %v1044_v8 }
 0x11c   :  { %v805_v34 = vadd.f32 %v804_v29, %v2346_v15  ;;  %v1667_v36 = vpop.f32.mrb[18].mxu1 }
 0x11d   :  { %v2402_v11 = vpop.f32.mrb[28].mxu0  ;;  %v816_v12 = vadd.f32 %v1667_v36, %v2348_v45  ;;  %v807_v40 = vpop.f32.mrb[19].mxu1  ;;  %1090 = vadd.xlane.f32.xlu1 %v1045_v33  ;;  %v1050_v16 = vmul.f32 %v2323_v9, %v813_v32 }
 0x11e   :  { %v2405_v37 = vpop.f32.mrb[29].mxu0  ;;  %v808_v39 = vadd.f32 %v807_v40, %v2353_v50  ;;  %v1048_v53 = vmul.f32 %v2323_v9, %v805_v34 }
 0x11f   :  { %v2409_v43 = vpop.f32.mrb[30].mxu0  ;;  %v1488_v49 = vpack.c.bf16 %v816_v12, %v813_v32  ;;  %1100 = vadd.xlane.f32.xlu0 %v1050_v16  ;;  %v1051_v52 = vmul.f32 %v2323_v9, %v816_v12 }
 0x120   :  { %v2412_v42 = vpop.f32.mrb[31].mxu0  ;;  %v1483_v15 = vpack.c.bf16 %v808_v39, %v805_v34  ;;  %v1049_v48 = vmul.f32 %v2323_v9, %v808_v39 }
 0x121   :  { %1528 = vst [vmem:[#allocation2 + $0x48] sm:$0xff] %v1488_v49   ;;  %1102 = vadd.xlane.f32.xlu1 %v1051_v52 }
 0x122   :  { %1527 = vst [vmem:[#allocation2 + $0x40] sm:$0xff] %v1483_v15   ;;  %1681 = vmatprep.subr.bf16.mxu1 %v1483_v15  ;;  %v1670_v45 = vpop.f32.mrb[20].mxu1 }
 0x123   :  { %1683 = vmatpush3.bf16.xpose.msra.mxu1 %v2337_v31  ;;  %v829_v18 = vadd.f32 %v1670_v45, %v2361_v20  ;;  %1096 = vadd.xlane.f32.xlu0 %v1048_v53  ;;  %v820_v50 = vpop.f32.mrb[21].mxu1 }
 0x124   :  { %1685 = vmatprep.subr.bf16.mxu1 %v1488_v49  ;;  %v821_v55 = vadd.f32 %v820_v50, %v2364_v35  ;;  %v1671_v56 = vpop.f32.mrb[22].mxu1 }
 0x125   :  { %1098 = vadd.xlane.f32.xlu1 %v1049_v48  ;;  %v832_v57 = vadd.f32 %v1671_v56, %v2366_v61  ;;  %v823_v59 = vpop.f32.mrb[23].mxu1  ;;  %v1054_v60 = vmul.f32 %v2323_v9, %v829_v18 }
 0x126   :  { %v824_v54 = vadd.f32 %v823_v59, %v2371_v19  ;;  %v1052_v20 = vmul.f32 %v2323_v9, %v821_v55 }
 0x127   :  { %v1498_v47 = vpack.c.bf16 %v832_v57, %v829_v18  ;;  %v1055_v31 = vmul.f32 %v2323_v9, %v832_v57  ;;  %1108 = vadd.xlane.f32.xlu0 %v1054_v60 }
 0x128   :  { %v1493_v25 = vpack.c.bf16 %v824_v54, %v821_v55  ;;  %v1053_v35 = vmul.f32 %v2323_v9, %v824_v54 }
 0x129   :  { %1530 = vst [vmem:[#allocation2 + $0x58] sm:$0xff] %v1498_v47   ;;  %1110 = vadd.xlane.f32.xlu1 %v1055_v31 }
 0x12a   :  { %1529 = vst [vmem:[#allocation2 + $0x50] sm:$0xff] %v1493_v25  }
 0x12b   :  { %1687 = vmatpush3.bf16.xpose.msra.mxu1 %v2333_v28  ;;  %1104 = vadd.xlane.f32.xlu0 %v1052_v20  ;;  %v1674_v61 = vpop.f32.mrb[24].mxu1 }
 0x12c   :  { %1689 = vmatprep.subr.bf16.mxu1 %v1493_v25  ;;  %v845_v58 = vadd.f32 %v1674_v61, %v2380_v2  ;;  %v836_v19 = vpop.f32.mrb[25].mxu1 }
 0x12d   :  { %1106 = vadd.xlane.f32.xlu1 %v1053_v35  ;;  %v837_v1 = vadd.f32 %v836_v19, %v2383_v13  ;;  %v1675_v3 = vpop.f32.mrb[26].mxu1 }
 0x12e   :  { %v848_v62 = vadd.f32 %v1675_v3, %v2387_v27  ;;  %v839_v4 = vpop.f32.mrb[27].mxu1  ;;  %v1058_v5 = vmul.f32 %v2323_v9, %v845_v58 }
 0x12f   :  { %v840_v10 = vadd.f32 %v839_v4, %v2390_v22  ;;  %v1056_v6 = vmul.f32 %v2323_v9, %v837_v1 }
 0x130   :  { %v1508_v17 = vpack.c.bf16 %v848_v62, %v845_v58  ;;  %v1059_v28 = vmul.f32 %v2323_v9, %v848_v62  ;;  %1116 = vadd.xlane.f32.xlu0 %v1058_v5 }
 0x131   :  { %v1503_v21 = vpack.c.bf16 %v840_v10, %v837_v1  ;;  %v1057_v2 = vmul.f32 %v2323_v9, %v840_v10 }
 0x132   :  { %1532 = vst [vmem:[#allocation2 + $0x68] sm:$0xff] %v1508_v17   ;;  %1118 = vadd.xlane.f32.xlu1 %v1059_v28 }
 0x133   :  { %1691 = vmatpush3.bf16.xpose.msra.mxu1 %v2355_v51  ;;  %1531 = vst [vmem:[#allocation2 + $0x60] sm:$0xff] %v1503_v21   ;;  %v1678_v13 = vpop.f32.mrb[28].mxu1 }
 0x134   :  { %1693 = vmatprep.subr.bf16.mxu1 %v1498_v47  ;;  %1112 = vadd.xlane.f32.xlu0 %v1056_v6  ;;  %v861_v27 = vadd.f32 %v1678_v13, %v2402_v11  ;;  %v852_v30 = vpop.f32.mrb[29].mxu1 }
 0x135   :  { %v853_v22 = vadd.f32 %v852_v30, %v2405_v37  ;;  %v1679_v7 = vpop.f32.mrb[30].mxu1 }
 0x136   :  { %1114 = vadd.xlane.f32.xlu1 %v1057_v2  ;;  %v864_v8 = vadd.f32 %v1679_v7, %v2409_v43  ;;  %v855_v24 = vpop.f32.mrb[31].mxu1  ;;  %v1062_v32 = vmul.f32 %v2323_v9, %v861_v27 }
 0x137   :  { %v856_v29 = vadd.f32 %v855_v24, %v2412_v42  ;;  %v1060_v51 = vmul.f32 %v2323_v9, %v853_v22 }
 0x138   :  { %v1518_v33 = vpack.c.bf16 %v864_v8, %v861_v27  ;;  %v1063_v34 = vmul.f32 %v2323_v9, %v864_v8 }
 0x139   :  { %v1513_v36 = vpack.c.bf16 %v856_v29, %v853_v22  ;;  %v1061_v11 = vmul.f32 %v2323_v9, %v856_v29  ;;  %1120 = vadd.xlane.f32.xlu0 %v1060_v51 }
 0x13a   :  { %1534 = vst [vmem:[#allocation2 + $0x78] sm:$0xff] %v1518_v33  }
 0x13b   :  { %1695 = vmatpush3.bf16.xpose.msra.mxu1 %v2350_v46  ;;  %1533 = vst [vmem:[#allocation2 + $0x70] sm:$0xff] %v1513_v36   ;;  %1122 = vadd.xlane.f32.xlu1 %v1061_v11 }
 0x13c   :  { %1697 = vmatprep.subr.bf16.mxu1 %v1503_v21 }
 0x13d   :  { %1124 = vadd.xlane.f32.xlu0 %v1062_v32 }
 0x13f   :  { %1126 = vadd.xlane.f32.xlu1 %v1063_v34 }
 0x143   :  { %1699 = vmatpush3.bf16.xpose.msra.mxu1 %v2373_v0 }
 0x144   :  { %1701 = vmatprep.subr.bf16.mxu1 %v1508_v17 }
 0x14b   :  { %1703 = vmatpush3.bf16.xpose.msra.mxu1 %v2368_v44 }
 0x14c   :  { %1705 = vmatprep.subr.bf16.mxu1 %v1513_v36 }
 0x153   :  { %1707 = vmatpush3.bf16.xpose.msra.mxu1 %v2395_v23 }
 0x154   :  { %1709 = vmatprep.subr.bf16.mxu1 %v1518_v33 }
 0x15b   :  { %1711 = vmatpush3.bf16.xpose.msra.mxu1 %v2392_v14 }
 0x162   :  { %1605 = vmatmul.mubr.f32.vlgmr.msra.gmra.mrb[32].mxu1 %v1162_v41 }
 0x18b   :  { %v1069_v9 = vpop.xlane.xlu1 %1068 }
 0x18c   :  { %1131 = vst.msk [vmem:[%s2611_s6 + $0x10] sm:$0xff] %vm1128_vm3, %v1069_v9  ;;  %v1065_v46 = vpop.xlane.xlu0 %1064 }
 0x18d   :  { %1129 = vst.msk [vmem:[%s2611_s6] sm:$0xff] %vm1128_vm3, %v1065_v46 }
 0x18f   :  { %v1071_v44 = vpop.xlane.xlu1 %1070 }
 0x190   :  { %1132 = vst.msk [vmem:[%s2611_s6 + $0x18] sm:$0xff] %vm1128_vm3, %v1071_v44  ;;  %v1067_v38 = vpop.xlane.xlu0 %1066 }
 0x191   :  { %1130 = vst.msk [vmem:[%s2611_s6 + $0x8] sm:$0xff] %vm1128_vm3, %v1067_v38 }
 0x194   :  { %v1077_v41 = vpop.xlane.xlu0 %1076 }
 0x195   :  { %1135 = vst.msk [vmem:[%s2611_s6 + $0x30] sm:$0xff] %vm1128_vm3, %v1077_v41  ;;  %v1079_v0 = vpop.xlane.xlu1 %1078 }
 0x196   :  { %1136 = vst.msk [vmem:[%s2611_s6 + $0x38] sm:$0xff] %vm1128_vm3, %v1079_v0 }
 0x198   :  { %v1073_v14 = vpop.xlane.xlu0 %1072 }
 0x199   :  { %1133 = vst.msk [vmem:[%s2611_s6 + $0x20] sm:$0xff] %vm1128_vm3, %v1073_v14  ;;  %v1075_v23 = vpop.xlane.xlu1 %1074 }
 0x19a   :  { %1134 = vst.msk [vmem:[%s2611_s6 + $0x28] sm:$0xff] %vm1128_vm3, %v1075_v23 }
 0x19c   :  { %v1085_v37 = vpop.xlane.xlu0 %1084 }
 0x19d   :  { %1139 = vst.msk [vmem:[%s2611_s6 + $0x50] sm:$0xff] %vm1128_vm3, %v1085_v37  ;;  %v1087_v12 = vpop.xlane.xlu1 %1086 }
 0x19e   :  { %1140 = vst.msk [vmem:[%s2611_s6 + $0x58] sm:$0xff] %vm1128_vm3, %v1087_v12 }
 0x1a0   :  { %v1081_v40 = vpop.xlane.xlu0 %1080 }
 0x1a1   :  { %1137 = vst.msk [vmem:[%s2611_s6 + $0x40] sm:$0xff] %vm1128_vm3, %v1081_v40  ;;  %v1083_v16 = vpop.xlane.xlu1 %1082 }
 0x1a2   :  { %1138 = vst.msk [vmem:[%s2611_s6 + $0x48] sm:$0xff] %vm1128_vm3, %v1083_v16 }
 0x1a4   :  { %v1093_v43 = vpop.xlane.xlu0 %1092 }
 0x1a5   :  { %1143 = vst.msk [vmem:[%s2611_s6 + $0x70] sm:$0xff] %vm1128_vm3, %v1093_v43 }
 0x1a6   :  { %v1095_v39 = vpop.xlane.xlu1 %1094 }
 0x1a7   :  { %1144 = vst.msk [vmem:[%s2611_s6 + $0x78] sm:$0xff] %vm1128_vm3, %v1095_v39 }
 0x1a8   :  { %v1089_v42 = vpop.xlane.xlu0 %1088 }
 0x1a9   :  { %1141 = vst.msk [vmem:[%s2611_s6 + $0x60] sm:$0xff] %vm1128_vm3, %v1089_v42 }
 0x1aa   :  { %v1091_v49 = vpop.xlane.xlu1 %1090 }
 0x1ab   :  { %1142 = vst.msk [vmem:[%s2611_s6 + $0x68] sm:$0xff] %vm1128_vm3, %v1091_v49 }
 0x1ac   :  { %v1101_v52 = vpop.xlane.xlu0 %1100 }
 0x1ad   :  { %1147 = vst.msk [vmem:[%s2611_s6 + $0x90] sm:$0xff] %vm1128_vm3, %v1101_v52 }
 0x1ae   :  { %v1103_v15 = vpop.xlane.xlu1 %1102 }
 0x1af   :  { %1148 = vst.msk [vmem:[%s2611_s6 + $0x98] sm:$0xff] %vm1128_vm3, %v1103_v15 }
 0x1b0   :  { %v1097_v53 = vpop.xlane.xlu0 %1096 }
 0x1b1   :  { %1145 = vst.msk [vmem:[%s2611_s6 + $0x80] sm:$0xff] %vm1128_vm3, %v1097_v53 }
 0x1b2   :  { %v1099_v45 = vpop.xlane.xlu1 %1098 }
 0x1b3   :  { %1146 = vst.msk [vmem:[%s2611_s6 + $0x88] sm:$0xff] %vm1128_vm3, %v1099_v45 }
 0x1b4   :  { %v1109_v18 = vpop.xlane.xlu0 %1108 }
 0x1b5   :  { %1151 = vst.msk [vmem:[%s2611_s6 + $0xb0] sm:$0xff] %vm1128_vm3, %v1109_v18 }
 0x1b6   :  { %v1111_v50 = vpop.xlane.xlu1 %1110 }
 0x1b7   :  { %1152 = vst.msk [vmem:[%s2611_s6 + $0xb8] sm:$0xff] %vm1128_vm3, %v1111_v50 }
 0x1b8   :  { %v1105_v48 = vpop.xlane.xlu0 %1104 }
 0x1b9   :  { %1149 = vst.msk [vmem:[%s2611_s6 + $0xa0] sm:$0xff] %vm1128_vm3, %v1105_v48 }
 0x1ba   :  { %v1107_v55 = vpop.xlane.xlu1 %1106 }
 0x1bb   :  { %1150 = vst.msk [vmem:[%s2611_s6 + $0xa8] sm:$0xff] %vm1128_vm3, %v1107_v55 }
 0x1bc   :  { %1909 = shalt.err (!%p1906_p4)
}
 0x1bd   :  { %s1910_s28 = scalar_lea.hbm %s2610_s5, 2048 }
 0x1be   :  { %p1911_p5 = scmp.ne.s32.totalorder %s2610_s5, %s1910_s28  ;;  %p1914_p6 = scmp.lt.u32.totalorder %s1910_s28, %s2610_s5 }
 0x1c0   :  { %p1916_p7 = pnand %p1914_p6, %p1911_p5 }
 0x1c2   :  { %1919 = shalt.err (!%p1916_p7)
}
 0x1c3   :  { %s1947_s8 = smov 64   ;;  %s1948_s9 = smov 4   ;;  %v1117_v56 = vpop.xlane.xlu0 %1116  ;;  %v1119_v57 = vpop.xlane.xlu1 %1118  ;;  %v1949_v25 = vmov 1966171168   ;;  %vm1255_vm4 = vcmp.lt.s32.totalorder %v1028_v63, 256 }
 0x1c4   :  { %1269 = dma.vmem_to_hbm [thread:$0]  %s1264_s23, 2048, %s2610_s5, [#allocation3], %s1947_s8, %s1947_s8, %s1948_s9   ;;  %v1239_v35 = vunpack.c.l.s4 %v1949_v25 }
 0x1c5   :  { %1155 = vst.msk [vmem:[%s2611_s6 + $0xd0] sm:$0xff] %vm1128_vm3, %v1117_v56  ;;  %1156 = vst.msk [vmem:[%s2611_s6 + $0xd8] sm:$0xff] %vm1128_vm3, %v1119_v57  ;;  %s1950_s25 = smov [#allocation4]  }
 0x1c6   :  { %v1240_v61 = vunpack.c.0.s8 %v1239_v35  ;;  %s1278_s0 = sshll.u32 %s1950_s25, 4  ;;  %s1279_s0 = int_to_ptr.vmem [resolvable:$true] %s1278_s0 }
 0x1c7   :  { %v1113_v59 = vpop.xlane.xlu0 %1112  ;;  %v1115_v60 = vpop.xlane.xlu1 %1114  ;;  %s1920_s26 = scalar_lea.vmem %s1279_s0, 32  ;;  %p1925_p9 = scmp.lt.s32.totalorder %s1279_s0, %s1279_s0 }
 0x1c8   :  { %1153 = vst.msk [vmem:[%s2611_s6 + $0xc0] sm:$0xff] %vm1128_vm3, %v1113_v59  ;;  %1154 = vst.msk [vmem:[%s2611_s6 + $0xc8] sm:$0xff] %vm1128_vm3, %v1115_v60  ;;  %v1243_v19 = vsub.s32 %v1240_v61, %v2319_v26  ;;  %p1921_p8 = scmp.ne.s32.totalorder %s1279_s0, %s1920_s26  ;;  %p1926_p10 = scmp.lt.s32.totalorder %s1920_s26, %s1920_s26 }
 0x1ca   :  { %p1927_p11 = por %p1926_p10, %p1925_p9 }
 0x1cb   :  { %v1121_v54 = vpop.xlane.xlu0 %1120  ;;  %v1123_v47 = vpop.xlane.xlu1 %1122 }
 0x1cc   :  { %1157 = vst.msk [vmem:[%s2611_s6 + $0xe0] sm:$0xff] %vm1128_vm3, %v1121_v54  ;;  %1158 = vst.msk [vmem:[%s2611_s6 + $0xe8] sm:$0xff] %vm1128_vm3, %v1123_v47  ;;  %p1928_p12 = pnand %p1927_p11, %p1921_p8 }
 0x1cf   :  { %v1125_v31 = vpop.xlane.xlu0 %1124  ;;  %v1127_v20 = vpop.xlane.xlu1 %1126 }
 0x1d0   :  { %1159 = vst.msk [vmem:[%s2611_s6 + $0xf0] sm:$0xff] %vm1128_vm3, %v1125_v31  ;;  %1160 = vst.msk [vmem:[%s2611_s6 + $0xf8] sm:$0xff] %vm1128_vm3, %v1127_v20 }
 0x235   :  { %v1230_v58 = vpop.f32.mrb[32].mxu1 }
 0x236   :  { %v1232_v1 = vpop.f32.mrb[33].mxu1 }
 0x237   :  { %v1237_v3 = vcombine.low %v1230_v58, %v1232_v1 }
 0x239   :  { %v1244_v62 = vrot.slane %v1237_v3, %v1243_v19 }
 0x23b   :  { %v1251_v4 = vrot.slane %v1244_v62, %v1243_v19 }
 0x23d   :  { %1257 = vst.msk [vmem:[#allocation4] sm:$0x3] %vm1255_vm4, %v1251_v4 }
 0x23e   :  { %1931 = shalt.err (!%p1928_p12)
}
 0x23f   :  { %s1932_s28 = scalar_lea.hbm %s2612_s7, 32 }
 0x240   :  { %p1933_p13 = scmp.ne.s32.totalorder %s2612_s7, %s1932_s28  ;;  %p1936_p0 = scmp.lt.u32.totalorder %s1932_s28, %s2612_s7 }
 0x242   :  { %p1938_p1 = pnand %p1936_p0, %p1933_p13 }
 0x244   :  { %1941 = shalt.err (!%p1938_p1)
}
 0x245   :  { %1281 = dma.vmem_to_hbm [thread:$0]  %s1279_s0, 32, %s2612_s7, [#allocation5]  }
 0x246   :  { %1942 = dma.done.wait [#allocation3], 2048  }
 0x247   :  { %1943 = vsyncadd [#allocation3], 4294965248 }
 0x248   :  { %1944 = dma.done.wait [#allocation5], 32  }
 0x249   :  { %1945 = vsyncadd [#allocation5], 4294967264 }
 0x24a   :  { %1290 = vsyncpa [#allocation3], 1 }
 0x24b   :  { %1291 = vsyncpa [#allocation5], 1 }

</bundles_post_ra>
